<compile_context>
chip_gen: v7x
topology: tpu7x:2x2x1
jax: 0.10.0
libtpu: 0.0.40
codegen_flags: <defaults>
</compile_context>

<pallas_src>
import functools

import jax
import jax.numpy as jnp
from jax.experimental import pallas as pl
from jax.experimental.pallas import tpu as pltpu

LANE = 128          # lane width: all feature dims padded to multiples of this
SUB = 16            # bf16 sublane granularity: row tiles padded to multiples of this
VMEM_LIMIT = 40 << 20
RESIDENT_BUDGET = 24 << 20


def _round_up(v, m):
    return (v + m - 1) // m * m


# -----------------------------------------------------------------------------
# Fused linear:  out = bn( relu( x @ w + b ) )   (relu / bn optional, fused epilogue)
# -----------------------------------------------------------------------------
def _linear_resident_kernel(x_ref, w_ref, b_ref, scale_ref, shift_ref, o_ref,
                            *, apply_relu: bool, apply_bn: bool):
    # Whole K in one shot; W is VMEM-resident (constant index_map).
    acc = jnp.dot(x_ref[...], w_ref[...], preferred_element_type=jnp.float32)
    out = acc + b_ref[...]
    if apply_relu:
        out = jnp.maximum(out, 0.0)
    if apply_bn:
        out = out * scale_ref[...] + shift_ref[...]
    o_ref[...] = out.astype(o_ref.dtype)


def _linear_tiled_kernel(x_ref, w_ref, b_ref, scale_ref, shift_ref, o_ref, acc_ref,
                         *, apply_relu: bool, apply_bn: bool):
    k = pl.program_id(1)

    @pl.when(k == 0)
    def _():
        acc_ref[...] = jnp.zeros_like(acc_ref)

    # f32 accumulation of the bf16 MXU partial product (scratch kept because the
    # output dtype may be bf16, so accumulating into o_ref directly would lose precision).
    acc_ref[...] += jnp.dot(x_ref[...], w_ref[...], preferred_element_type=jnp.float32)

    @pl.when(k == pl.num_programs(1) - 1)
    def _():
        out = acc_ref[...] + b_ref[...]
        if apply_relu:
            out = jnp.maximum(out, 0.0)
        if apply_bn:
            out = out * scale_ref[...] + shift_ref[...]
        o_ref[...] = out.astype(o_ref.dtype)


def fused_linear_padded(x, w, b, scale, shift, *, apply_relu, apply_bn, out_dtype, tm):
    """x: [m_pad, k_pad] bf16 (m_pad % tm == 0), w: [k_pad, f_pad] bf16,
    b/scale/shift: [1, f_pad] f32. Returns [m_pad, f_pad] out_dtype (padded cols stay 0)."""
    m_pad, k_pad = x.shape
    _, f_pad = w.shape
    out_item = jnp.dtype(out_dtype).itemsize

    cost = pl.CostEstimate(
        flops=2 * m_pad * k_pad * f_pad,
        transcendentals=0,
        bytes_accessed=m_pad * k_pad * 2 + k_pad * f_pad * 2 + m_pad * f_pad * out_item)

    # VMEM needed for the resident (single-K) path: double-buffered x/out tiles + resident W.
    resident_bytes = (2 * tm * k_pad * 2 + 2 * k_pad * f_pad * 2
                      + 2 * tm * f_pad * out_item + 6 * f_pad * 4
                      + tm * f_pad * 4)
    if resident_bytes <= RESIDENT_BUDGET:
        kernel = functools.partial(_linear_resident_kernel,
                                   apply_relu=apply_relu, apply_bn=apply_bn)
        return pl.pallas_call(
            kernel,
            out_shape=jax.ShapeDtypeStruct((m_pad, f_pad), out_dtype),
            grid=(m_pad // tm,),
            in_specs=[
                pl.BlockSpec((tm, k_pad), lambda i: (i, 0)),        # x row tile
                pl.BlockSpec((k_pad, f_pad), lambda i: (0, 0)),     # W (resident)
                pl.BlockSpec((1, f_pad), lambda i: (0, 0)),         # bias
                pl.BlockSpec((1, f_pad), lambda i: (0, 0)),         # bn scale
                pl.BlockSpec((1, f_pad), lambda i: (0, 0)),         # bn shift
            ],
            out_specs=pl.BlockSpec((tm, f_pad), lambda i: (i, 0)),
            compiler_params=pltpu.CompilerParams(
                dimension_semantics=("parallel",),
                vmem_limit_bytes=VMEM_LIMIT),
            cost_estimate=cost,
        )(x, w, b, scale, shift)

    # Large-K fallback: software-pipelined K reduction.
    tk = 128
    for cand in (1024, 512, 256):
        if k_pad % cand == 0:
            tk = cand
            break
    kernel = functools.partial(_linear_tiled_kernel,
                               apply_relu=apply_relu, apply_bn=apply_bn)
    return pl.pallas_call(
        kernel,
        out_shape=jax.ShapeDtypeStruct((m_pad, f_pad), out_dtype),
        grid=(m_pad // tm, k_pad // tk),
        in_specs=[
            pl.BlockSpec((tm, tk), lambda i, kk: (i, kk)),
            pl.BlockSpec((tk, f_pad), lambda i, kk: (kk, 0)),
            pl.BlockSpec((1, f_pad), lambda i, kk: (0, 0)),
            pl.BlockSpec((1, f_pad), lambda i, kk: (0, 0)),
            pl.BlockSpec((1, f_pad), lambda i, kk: (0, 0)),
        ],
        out_specs=pl.BlockSpec((tm, f_pad), lambda i, kk: (i, 0)),
        scratch_shapes=[pltpu.VMEM((tm, f_pad), jnp.float32)],
        compiler_params=pltpu.CompilerParams(
            dimension_semantics=("parallel", "arbitrary"),
            vmem_limit_bytes=VMEM_LIMIT),
        cost_estimate=cost,
    )(x, w, b, scale, shift)


# -----------------------------------------------------------------------------
# LINKX combine:  relu( [xA,xX] @ W + b  (+relu if inner_activation)  + xA + xX )
# Concat eliminated by splitting W into Wa / Wx (cat@W == xA@Wa + xX@Wx).
# -----------------------------------------------------------------------------
def _combine_kernel(xa_ref, xx_ref, wa_ref, wx_ref, b_ref, o_ref, *, inner_activation: bool):
    xa = xa_ref[...]
    xx = xx_ref[...]
    t = jnp.dot(xa, wa_ref[...], preferred_element_type=jnp.float32)
    t = t + jnp.dot(xx, wx_ref[...], preferred_element_type=jnp.float32)
    t = t + b_ref[...]
    if inner_activation:
        t = jnp.maximum(t, 0.0)
    # inner_dropout: identity in eval mode
    t = t + xa.astype(jnp.float32) + xx.astype(jnp.float32)
    o_ref[...] = jnp.maximum(t, 0.0).astype(o_ref.dtype)


def linkx_combine(xa, xx, wa, wx, b, *, inner_activation, tm):
    """xa/xx: [m_pad, h_pad] bf16, wa/wx: [h_pad, h_pad] bf16, b: [1, h_pad] f32."""
    m_pad, h_pad = xa.shape
    cost = pl.CostEstimate(
        flops=4 * m_pad * h_pad * h_pad,
        transcendentals=0,
        bytes_accessed=4 * m_pad * h_pad * 2 + 2 * h_pad * h_pad * 2)
    kernel = functools.partial(_combine_kernel, inner_activation=inner_activation)
    return pl.pallas_call(
        kernel,
        out_shape=jax.ShapeDtypeStruct((m_pad, h_pad), jnp.bfloat16),
        grid=(m_pad // tm,),
        in_specs=[
            pl.BlockSpec((tm, h_pad), lambda i: (i, 0)),
            pl.BlockSpec((tm, h_pad), lambda i: (i, 0)),
            pl.BlockSpec((h_pad, h_pad), lambda i: (0, 0)),   # Wa resident
            pl.BlockSpec((h_pad, h_pad), lambda i: (0, 0)),   # Wx resident
            pl.BlockSpec((1, h_pad), lambda i: (0, 0)),
        ],
        out_specs=pl.BlockSpec((tm, h_pad), lambda i: (i, 0)),
        compiler_params=pltpu.CompilerParams(
            dimension_semantics=("parallel",),
            vmem_limit_bytes=VMEM_LIMIT),
        cost_estimate=cost,
    )(xa, xx, wa, wx, b)


# -----------------------------------------------------------------------------
# Parameter init (padding hoisted to init time) / model wrapper (eval forward)
# -----------------------------------------------------------------------------
def _init_linear(key, fin, fout):
    kw, kb = jax.random.split(key)
    bound = 1.0 / (fin ** 0.5)
    w = jax.random.uniform(kw, (fin, fout), jnp.float32, -bound, bound)
    b = jax.random.uniform(kb, (fout,), jnp.float32, -bound, bound)
    return w, b


def _pad_layer(w, b, scale, shift):
    fin, fout = w.shape
    kp, fp = _round_up(fin, LANE), _round_up(fout, LANE)
    wp = jnp.pad(w, ((0, kp - fin), (0, fp - fout))).astype(jnp.bfloat16)
    bp = jnp.pad(b, (0, fp - fout)).reshape(1, fp).astype(jnp.float32)
    sp = jnp.pad(scale, (0, fp - fout), constant_values=1.0).reshape(1, fp).astype(jnp.float32)
    shp = jnp.pad(shift, (0, fp - fout)).reshape(1, fp).astype(jnp.float32)
    return wp, bp, sp, shp


def init_mlp(key, in_channels, hidden_channels, out_channels, num_layers):
    """Padded bf16 weights + f32 bias / eval-mode BN affine (gamma=1, beta=0, mean=0, var=1)."""
    if num_layers == 1:
        dims = [(in_channels, out_channels)]
    else:
        dims = ([(in_channels, hidden_channels)]
                + [(hidden_channels, hidden_channels)] * (num_layers - 2)
                + [(hidden_channels, out_channels)])
    params = []
    eps = 1e-5
    for i, (fi, fo) in enumerate(dims):
        key, sub = jax.random.split(key)
        w, b = _init_linear(sub, fi, fo)
        if i < len(dims) - 1:
            scale = jnp.full((fo,), 1.0 / jnp.sqrt(1.0 + eps), jnp.float32)
            shift = jnp.zeros((fo,), jnp.float32)
        else:
            scale = jnp.ones((fo,), jnp.float32)
            shift = jnp.zeros((fo,), jnp.float32)
        params.append(_pad_layer(w, b, scale, shift))
    return params


def mlp_forward(params, x, *, tm, out_dtype=jnp.bfloat16):
    """hidden layers: Linear -> ReLU -> BN(eval affine) [-> Dropout(identity)]; last: Linear."""
    n_layers = len(params)
    for i, (w, b, scale, shift) in enumerate(params):
        is_hidden = i < n_layers - 1
        dt = jnp.bfloat16 if is_hidden else out_dtype
        x = fused_linear_padded(x, w, b, scale, shift,
                                apply_relu=is_hidden, apply_bn=is_hidden,
                                out_dtype=dt, tm=tm)
    return x


class LINKXPallas:
    def __init__(self, in_channels, hidden_channels, out_channels, num_layers, num_nodes,
                 dropout, link_init_layers_A, link_init_layers_X,
                 inner_activation, inner_dropout, key):
        self.num_nodes = num_nodes
        self.num_nodes_pad = _round_up(num_nodes, LANE)
        self.in_channels = in_channels
        self.in_pad = _round_up(in_channels, LANE)
        self.h_pad = _round_up(hidden_channels, LANE)
        self.out_channels = out_channels
        self.inner_activation = inner_activation
        self.inner_dropout = inner_dropout

        kA, kX, kW, kF = jax.random.split(key, 4)
        self.mlpA = init_mlp(kA, num_nodes, hidden_channels, hidden_channels, link_init_layers_A)
        self.mlpX = init_mlp(kX, in_channels, hidden_channels, hidden_channels, link_init_layers_X)
        # W : Linear(2*hidden -> hidden), split row-wise so cat([xA,xX]) @ W == xA@Wa + xX@Wx
        w_full, b_w = _init_linear(kW, 2 * hidden_channels, hidden_channels)
        h, hp = hidden_channels, self.h_pad
        self.Wa = jnp.pad(w_full[:h, :], ((0, hp - h), (0, hp - h))).astype(jnp.bfloat16)
        self.Wx = jnp.pad(w_full[h:, :], ((0, hp - h), (0, hp - h))).astype(jnp.bfloat16)
        self.Wb = jnp.pad(b_w, (0, hp - h)).reshape(1, hp).astype(jnp.float32)
        self.mlp_final = init_mlp(kF, hidden_channels, hidden_channels, out_channels, num_layers)

    def __call__(self, x, edge_index):
        n, in_ch = x.shape
        # Row tile: <=512, 16-multiple, and small enough that there are >=2 row tiles
        # (keeps both v7x TensorCores busy via the "parallel" grid axis).
        tm = min(512, _round_up(max((n + 1) // 2, 1), SUB))
        m_pad = _round_up(n, tm)

        row = edge_index[0].astype(jnp.int32)
        col = edge_index[1].astype(jnp.int32)
        row = row - jnp.min(row)
        # Dense adjacency built directly at padded shape in bf16 (counts are exact);
        # duplicate edges accumulate, matching the coalesced-sum sparse matmul.
        a = jnp.zeros((m_pad, self.num_nodes_pad), jnp.bfloat16)
        a = a.at[row, col].add(jnp.ones(row.shape, jnp.bfloat16))

        # Input features built directly at padded shape in bf16.
        xf = jnp.zeros((m_pad, self.in_pad), jnp.bfloat16)
        xf = xf.at[:n, :in_ch].set(x.astype(jnp.bfloat16))

        xa = mlp_forward(self.mlpA, a, tm=tm)
        xx = mlp_forward(self.mlpX, xf, tm=tm)
        h = linkx_combine(xa, xx, self.Wa, self.Wx, self.Wb,
                          inner_activation=self.inner_activation, tm=tm)
        # dropout inside MLPs / inner_dropout: identity in eval mode
        out = mlp_forward(self.mlp_final, h, tm=tm, out_dtype=jnp.float32)
        return out[:n, :self.out_channels]


if __name__ == "__main__":
    key = jax.random.PRNGKey(0)

    # Small deterministic example consistent with the module's forward.
    num_nodes = 256
    in_channels = 32
    hidden_channels = 128
    out_channels = 8
    num_layers = 2            # mlp_final depth
    link_init_layers_A = 2
    link_init_layers_X = 2
    dropout = 0.5
    inner_activation = False
    inner_dropout = False

    key, xk, mk = jax.random.split(key, 3)
    x = jax.random.normal(xk, (num_nodes, in_channels), jnp.float32)

    # Deterministic bidirectional ring graph, shape [2, E].
    idx = jnp.arange(num_nodes)
    src = jnp.concatenate([idx, (idx + 1) % num_nodes])
    dst = jnp.concatenate([(idx + 1) % num_nodes, idx])
    edge_index = jnp.stack([src, dst], axis=0)

    model = LINKXPallas(in_channels, hidden_channels, out_channels, num_layers, num_nodes,
                        dropout, link_init_layers_A, link_init_layers_X,
                        inner_activation, inner_dropout, mk)

    out = model(x, edge_index)
    out = jax.block_until_ready(out)

    assert out.shape == (num_nodes, out_channels), out.shape
    assert bool(jnp.all(jnp.isfinite(out)))
    print("KERNEL_OK")
</pallas_src>

<mosaic_0001>
module attributes {stable_mosaic.version = 11 : i64} {
  func.func @_linear_resident_kernel(%arg0: i32, %arg1: memref<128x256xbf16, #tpu.memory_space<vmem>>, %arg2: memref<256x128xbf16, #tpu.memory_space<vmem>>, %arg3: memref<1x128xf32, #tpu.memory_space<vmem>>, %arg4: memref<1x128xf32, #tpu.memory_space<vmem>>, %arg5: memref<1x128xf32, #tpu.memory_space<vmem>>, %arg6: memref<128x128xbf16, #tpu.memory_space<vmem>>) attributes {dimension_semantics = [#tpu.dimension_semantics<parallel>], iteration_bounds = array<i64: 2>, scalar_prefetch = 0 : i64, scratch_operands = 0 : i64, tpu.core_type = #tpu.core_type<tc>, window_params = [{transform_indices = @transform_0, window_bounds = array<i64: 128, 256>}, {pipeline_mode = #tpu.pipeline_mode<synchronous>, transform_indices = @transform_1, window_bounds = array<i64: 256, 128>}, {pipeline_mode = #tpu.pipeline_mode<synchronous>, transform_indices = @transform_2, window_bounds = array<i64: 1, 128>}, {pipeline_mode = #tpu.pipeline_mode<synchronous>, transform_indices = @transform_3, window_bounds = array<i64: 1, 128>}, {pipeline_mode = #tpu.pipeline_mode<synchronous>, transform_indices = @transform_4, window_bounds = array<i64: 1, 128>}, {transform_indices = @transform_5, window_bounds = array<i64: 128, 128>}]} {
    %c0 = arith.constant 0 : index
    %c0_0 = arith.constant 0 : index
    %0 = vector.load %arg1[%c0, %c0_0] : memref<128x256xbf16, #tpu.memory_space<vmem>>, vector<128x256xbf16>
    %c0_1 = arith.constant 0 : index
    %c0_2 = arith.constant 0 : index
    %1 = vector.load %arg2[%c0_1, %c0_2] : memref<256x128xbf16, #tpu.memory_space<vmem>>, vector<256x128xbf16>
    %cst = arith.constant dense<0.000000e+00> : vector<128x128xf32>
    %2 = tpu.matmul %0, %1, %cst {dimension_numbers = #tpu.dot_dimension_numbers<[1], [0], [0], [1], [0, 0, 1, 1], [], []>} : vector<128x256xbf16>, vector<256x128xbf16>, vector<128x128xf32> -> vector<128x128xf32>
    %c0_3 = arith.constant 0 : index
    %c0_4 = arith.constant 0 : index
    %3 = vector.load %arg3[%c0_3, %c0_4] : memref<1x128xf32, #tpu.memory_space<vmem>>, vector<1x128xf32>
    %4 = vector.broadcast %3 : vector<1x128xf32> to vector<128x128xf32>
    %5 = arith.addf %2, %4 : vector<128x128xf32>
    %cst_5 = arith.constant 0.000000e+00 : f32
    %6 = vector.broadcast %cst_5 : f32 to vector<128x128xf32>
    %7 = arith.maximumf %5, %6 : vector<128x128xf32>
    %c0_6 = arith.constant 0 : index
    %c0_7 = arith.constant 0 : index
    %8 = vector.load %arg4[%c0_6, %c0_7] : memref<1x128xf32, #tpu.memory_space<vmem>>, vector<1x128xf32>
    %9 = vector.broadcast %8 : vector<1x128xf32> to vector<128x128xf32>
    %10 = arith.mulf %7, %9 : vector<128x128xf32>
    %c0_8 = arith.constant 0 : index
    %c0_9 = arith.constant 0 : index
    %11 = vector.load %arg5[%c0_8, %c0_9] : memref<1x128xf32, #tpu.memory_space<vmem>>, vector<1x128xf32>
    %12 = vector.broadcast %11 : vector<1x128xf32> to vector<128x128xf32>
    %13 = arith.addf %10, %12 : vector<128x128xf32>
    %14 = arith.truncf %13 : vector<128x128xf32> to vector<128x128xbf16>
    %c0_10 = arith.constant 0 : index
    %c0_11 = arith.constant 0 : index
    %15 = vector.load %arg6[%c0_10, %c0_11] : memref<128x128xbf16, #tpu.memory_space<vmem>>, vector<128x128xbf16>
    tpu.vector_store %arg6[%c0_10, %c0_11], %14 {strides = array<i32>} : memref<128x128xbf16, #tpu.memory_space<vmem>>, vector<128x128xbf16>,
    return
  }
  func.func @transform_0(%arg0: i32) -> (i32, i32) {
    %c0_i32 = arith.constant 0 : i32
    %c0_i32_0 = arith.constant 0 : i32
    return %arg0, %c0_i32 : i32, i32
  }
  func.func @transform_1(%arg0: i32) -> (i32, i32) {
    %c0_i32 = arith.constant 0 : i32
    %c0_i32_0 = arith.constant 0 : i32
    %c0_i32_1 = arith.constant 0 : i32
    return %c0_i32, %c0_i32_0 : i32, i32
  }
  func.func @transform_2(%arg0: i32) -> (i32, i32) {
    %c0_i32 = arith.constant 0 : i32
    %c0_i32_0 = arith.constant 0 : i32
    %c0_i32_1 = arith.constant 0 : i32
    return %c0_i32, %c0_i32_0 : i32, i32
  }
  func.func @transform_3(%arg0: i32) -> (i32, i32) {
    %c0_i32 = arith.constant 0 : i32
    %c0_i32_0 = arith.constant 0 : i32
    %c0_i32_1 = arith.constant 0 : i32
    return %c0_i32, %c0_i32_0 : i32, i32
  }
  func.func @transform_4(%arg0: i32) -> (i32, i32) {
    %c0_i32 = arith.constant 0 : i32
    %c0_i32_0 = arith.constant 0 : i32
    %c0_i32_1 = arith.constant 0 : i32
    return %c0_i32, %c0_i32_0 : i32, i32
  }
  func.func @transform_5(%arg0: i32) -> (i32, i32) {
    %c0_i32 = arith.constant 0 : i32
    %c0_i32_0 = arith.constant 0 : i32
    return %arg0, %c0_i32 : i32, i32
  }
}

</mosaic_0001>

<bundles_post_ra>
// kernel: tpu_custom_call.1
= control target key start
LH: loop header
LB: loop body
LE: loop exit
PB: predicated region body
PF: predicated region fallthrough
CT: control target
= control target key end

     0   :  { %10 = vsyncpa [#allocation3], 0  ;;  %s1609_s0 = inlined_call_operand.hbm [shape: bf16[256,256], index: 0, kind: input, shape index: {}]   ;;  %s1610_s1 = inlined_call_operand.hbm [shape: bf16[256,128], index: 1, kind: input, shape index: {}]   ;;  %s1611_s2 = inlined_call_operand.vmem [shape: f32[1,128], index: 2, kind: input, shape index: {}]   ;;  %s1612_s3 = inlined_call_operand.vmem [shape: f32[1,128], index: 3, kind: input, shape index: {}]   ;;  %s1613_s4 = inlined_call_operand.vmem [shape: f32[1,128], index: 4, kind: input, shape index: {}]   ;;  %s1614_s5 = inlined_call_operand.hbm [shape: bf16[256,128], index: 5, kind: output, shape index: {}]  }
   0x1   :  { %12 = vsyncpa [#allocation3 + $0x1], 0 }
   0x2   :  { %13 = vsyncpa [#allocation6], 0 }
   0x3   :  { %14 = vsyncpa [#allocation4], 0 }
   0x4   :  { %16 = vsyncpa [#allocation4 + $0x1], 0  ;;  %s1315_s18 = smov 0   ;;  %s1317_s19 = smov 0  }
   0x5   :  { %s1319_s20 = smov 0   ;;  %s1321_s21 = smov 0  }
   0x6 LB: > { %s1336_s22 = sadd.s32 4294967295, %s1274_s21   ;;  %s829_s23 = sadd.s32 4294967294, %s1274_s21   ;;  %s1274_s21 = sphi %s1321_s21, %s1634_s21   ;;  %s1270_s20 = sphi %s1319_s20, %s1633_s20   ;;  %s1266_s19 = sphi %s1317_s19, %s1632_s19   ;;  %s1262_s18 = sphi %s1315_s18, %s1631_s18  }
   0x7   : > { %p42_p0 = scmp.ne.s32.totalorder %s1266_s19, %s1262_s18  ;;  %p1615_p1 = scmp.eq.s32.totalorder %s1336_s22, 0 }
   0x8   : > { %p156_p3 = scmp.eq.s32.totalorder %s829_s23, 1  ;;  %p830_p5 = scmp.ge.s32.totalorder %s1274_s21, 1 }
   0x9   : > { %p1345_p4 = por %p1615_p1, %p42_p0  ;;  %p163_p7 = scmp.lt.s32.totalorder %s1274_s21, 3 }
   0xa   : > { %p1350_p6 = por %p156_p3, %p42_p0  ;;  %s1276_s27 = smov [#allocation5]  }
   0xb   : > { %s1618_s24 = scalar_select %p1345_p4, 1, 0 }
   0xc   : > { %s1619_s25 = scalar_select %p1350_p6, 1, 0 }
   0xd   : > { %p1355_p8 = pnand %p830_p5, %p163_p7  ;;  %s175_s28 = sshll.u32 %s1276_s27, 4  ;;  %s1359_s28 = int_to_ptr.vmem [resolvable:$true] %s175_s28 }
   0xe   : > { %s1371_s30 = sadd.s32 1, %s1274_s21   ;;  %s29_s6 = sadd.s32 1, %s1270_s20 }
   0xf   : > { %s1620_s26 = scalar_select %p1355_p8, 1, 0 }
  0x10   : > { %p1051_p9 = pneg %p1355_p8  ;;  %s26_s7 = ssub.s32 %s1274_s21, %s1371_s30 }
  0x11   : > { %s1146_s10 = scalar_lea.hbm %s1610_s1, 2048 }
  0x12   : > { %p1366_p11 = pnand %p1051_p9, %p1615_p1  ;;  %p1147_p12 = scmp.ne.s32.totalorder %s1610_s1, %s1146_s10 }
  0x13   : > { %p1153_p5 = scmp.lt.u32.totalorder %s1146_s10, %s1610_s1 }
  0x14   : > { %p1148_p13 = pneg %p1366_p11 }
  0x16   : > { %p1149_p0 = pnand %p1148_p13, %p1147_p12 }
  0x18   : > { %p1150_p3 = pneg %p1149_p0 }
  0x1a   : > { %p1155_p7 = pnand %p1153_p5, %p1150_p3 }
  0x1c   : > { %1158 = shalt.err (!%p1155_p7)
}
  0x1d   : > { %s1159_s15 = scalar_lea.vmem %s1359_s28, 2048  ;;  %p1167_p2 = scmp.lt.s32.totalorder %s1359_s28, %s1359_s28 }
  0x1e   : > { %p1160_p9 = scmp.ne.s32.totalorder %s1359_s28, %s1159_s15  ;;  %p1168_p6 = scmp.lt.s32.totalorder %s1159_s15, %s1159_s15 }
  0x20   : > { %p1162_p10 = pnand %p1160_p9, %p1148_p13  ;;  %p1169_p4 = por %p1168_p6, %p1167_p2 }
  0x22   : > { %p1163_p1 = pneg %p1162_p10 }
  0x24   : > { %p1170_p8 = pnand %p1169_p4, %p1163_p1 }
  0x26   : > { %1173 = shalt.err (!%p1170_p8)
}
  0x27   : > { %s1277_s16 = smov 64   ;;  %s1278_s17 = smov 4  }
  0x28   : > { %1054 = dma.hbm_to_vmem [thread:$0]  (!%p1366_p11), %s1610_s1, 2048, %s1359_s28, [#allocation6], %s1277_s16, %s1277_s16, %s1278_s17  }
  0x29   : > { %p27_p2 = scmp.eq.s32.totalorder %s26_s7, 0  ;;  %p36_p1 = scmp.ne.s32.totalorder %s1270_s20, %s1266_s19 }
  0x2a   : > { %p37_p4 = scmp.eq.s32.totalorder %s1274_s21, 0  ;;  %p1064_p6 = scmp.lt.s32.totalorder %s1274_s21, 2 }
  0x2b   : > { %s1402_s8 = scalar_select %p27_p2, %s1270_s20, %s29_s6  }
  0x2c   : > { %p38_p8 = por %p37_p4, %p36_p1  ;;  %p1622_p10 = scmp.eq.s32.totalorder %s1336_s22, 1 }
  0x2d   : > { %s198_s10 = sand.u32 1, %s1270_s20   ;;  %s898_s11 = sshll.u32 %s1274_s21, 11 }
  0x2e   : > { %p1406_p12 = por %p1622_p10, %p36_p1  ;;  %s833_s12 = sshll.u32 %s198_s10, 7 }
  0x2f   : > { %s1415_s14 = scalar_lea.hbm %s1609_s0, %s898_s11  ;;  %s202_s28 = scalar_lea.vmem [#allocation2], %s833_s12 }
  0x30   : > { %s210_s6 = sshll.u32 %s202_s28, 4  ;;  %p1417_p11 = pnand %p1064_p6, %p38_p8  ;;  %s1421_s6 = int_to_ptr.vmem [resolvable:$true] %s210_s6 }
  0x31   : > { %s1423_s15 = scalar_lea.sflag [#allocation3], %s198_s10  ;;  %s1174_s16 = scalar_lea.hbm %s1415_s14, 2048 }
  0x32   : > { %p1175_p13 = scmp.ne.s32.totalorder %s1415_s14, %s1174_s16  ;;  %p1176_p0 = pneg %p1417_p11 }
  0x33   : > { %s1179_s27 = scalar_lea.hbm %s1609_s0, 4096  ;;  %p1180_p7 = scmp.lt.u32.totalorder %s1415_s14, %s1609_s0 }
  0x34   : > { %p1177_p3 = pnand %p1176_p0, %p1175_p13  ;;  %p1181_p9 = scmp.lt.u32.totalorder %s1179_s27, %s1174_s16 }
  0x35   : > { %p1183_p1 = scmp.lt.u32.totalorder %s1174_s16, %s1415_s14 }
  0x36   : > { %p1178_p5 = pneg %p1177_p3  ;;  %p1182_p2 = por %p1181_p9, %p1180_p7 }
  0x38   : > { %p1184_p4 = por %p1183_p1, %p1182_p2 }
  0x3a   : > { %p1185_p6 = pnand %p1184_p4, %p1178_p5 }
  0x3c   : > { %1188 = shalt.err (!%p1185_p6)
}
  0x3d   : > { %s1189_s10 = scalar_lea.vmem %s1421_s6, 2048  ;;  %s1279_s29 = smov [#allocation2]  }
  0x3e   : > { %p1190_p8 = scmp.ne.s32.totalorder %s1421_s6, %s1189_s10  ;;  %s1194_s13 = sshll.u32 %s1279_s29, 4  ;;  %s1195_s13 = int_to_ptr.vmem [resolvable:$false] %s1194_s13 }
  0x3f   : > { %s1196_s28 = scalar_lea.vmem %s1195_s13, 4096  ;;  %p1197_p3 = scmp.lt.s32.totalorder %s1421_s6, %s1195_s13 }
  0x40   : > { %p1192_p10 = pnand %p1190_p8, %p1176_p0  ;;  %p1198_p7 = scmp.lt.s32.totalorder %s1196_s28, %s1189_s10 }
  0x42   : > { %p1193_p13 = pneg %p1192_p10  ;;  %p1199_p9 = por %p1198_p7, %p1197_p3 }
  0x44   : > { %p1200_p2 = pnand %p1199_p9, %p1193_p13 }
  0x46   : > { %1203 = shalt.err (!%p1200_p2)
}
  0x47   : > { %s1280_s16 = smov 128   ;;  %s1281_s17 = smov 8  }
  0x48   : > { %1058 = dma.hbm_to_vmem [thread:$0]  (!%p1417_p11), %s1415_s14, 2048, %s1421_s6, %s1423_s15, %s1280_s16, %s1280_s16, %s1281_s17  }
  0x49   : > { %p1625_p0 = scmp.ne.s32.totalorder %s1620_s26, 0 }
  0x4a   : > { %s1454_s23 = sand.u32 (!%p1625_p0), 1, %s1266_s19   ;;  %p1626_p5 = scmp.ne.s32.totalorder (!%p1625_p0), %s1618_s24, 0 }
  0x4b   : > { %222 = sbr.rel (%p1625_p0) target bundleno = 385 (0x181), region = 40  ;;  %s838_s27 = sshll.u32 (!%p1625_p0), %s1454_s23, 7 }
  0x4c   : > { %s225_s11 = scalar_lea.sflag (!%p1625_p0), [#allocation3], %s1454_s23  ;;  %s1458_s12 = scalar_lea.vmem (!%p1625_p0), [#allocation2], %s838_s27 }
  0x52   : > { %1249 = dma.done.wait (%p1626_p5), %s225_s11, 2048  }
  0x53   : > { %1251 = vsyncadd (%p1626_p5), %s225_s11, 4294965248  ;;  %p1627_p11 = scmp.eq.s32.totalorder %s1336_s22, 0 }
  0x55   : > { %1253 = dma.done.wait (%p1627_p11), [#allocation6], 2048   ;;  %p1628_p1 = pmov %p1627_p11 }
  0x56   : > { %v1106_v0 = vld [vmem:[#allocation5 + $0x40] sm:$0xff]   ;;  %v1108_v2 = vld [vmem:[#allocation5 + $0x48] sm:$0xff]   ;;  %v1110_v4 = vld [vmem:[#allocation5 + $0x50] sm:$0xff]   ;;  %s840_s10 = sshll.u32 %s1454_s23, 6  ;;  %s915_s13 = sshll.u32 %s1336_s22, 10 }
  0x57   : > { %1255 = vsyncadd (%p1628_p1), [#allocation6], 4294965248  ;;  %v1107_v1 = vld [vmem:[#allocation5] sm:$0xff]   ;;  %963 = vmatprep.subr.bf16.mxu0 %v1106_v0  ;;  %1027 = vmatprep.subr.bf16.mxu1 %v1106_v0  ;;  %v1109_v3 = vld [vmem:[#allocation5 + $0x8] sm:$0xff]   ;;  %s1516_s29 = scalar_lea.vmem [#allocation7], %s840_s10  ;;  %s1561_s27 = scalar_lea.hbm %s1614_s5, %s915_s13 }
  0x58   : > { %964 = vmatpush3.bf16.msra.mxu0 %v1107_v1  ;;  %1035 = vmatpush3.bf16.msra.mxu1 %v1107_v1  ;;  %v1111_v5 = vld [vmem:[#allocation5 + $0x10] sm:$0xff]   ;;  %v1112_v6 = vld [vmem:[#allocation5 + $0x58] sm:$0xff]   ;;  %v1114_v8 = vld [vmem:[#allocation5 + $0x60] sm:$0xff]   ;;  %s746_s28 = sshll.u32 %s1516_s29, 4  ;;  %s733_s22 = scalar_lea.sflag [#allocation4], %s1454_s23  ;;  %s1563_s28 = int_to_ptr.vmem [resolvable:$true] %s746_s28 }
  0x59   : > { %965 = vmatprep.subr.bf16.mxu0 %v1108_v2  ;;  %1028 = vmatprep.subr.bf16.mxu1 %v1108_v2  ;;  %v1113_v7 = vld [vmem:[#allocation5 + $0x18] sm:$0xff]   ;;  %v1115_v9 = vld [vmem:[#allocation5 + $0x20] sm:$0xff]   ;;  %v1116_v10 = vld [vmem:[#allocation5 + $0x68] sm:$0xff]   ;;  %s1204_s11 = scalar_lea.vmem %s1563_s28, 1024 }
  0x5a   : > { %v1124_v11 = vld [vmem:[%s1458_s12 + $0x4] ss:$8 sps:$4 sm:$0xff]   ;;  %v1118_v14 = vld [vmem:[#allocation5 + $0x70] sm:$0xff]   ;;  %v1120_v16 = vld [vmem:[#allocation5 + $0x78] sm:$0xff]   ;;  %p1205_p4 = scmp.ne.s32.totalorder %s1563_s28, %s1204_s11 }
  0x5b   : > { %v1127_v12 = vld [vmem:[%s1458_s12 + $0x44] ss:$8 sps:$4 sm:$0xff]   ;;  %525 = vmatprep.mubr.bf16.mxu0 %v1124_v11  ;;  %v1119_v15 = vld [vmem:[#allocation5 + $0x30] sm:$0xff]   ;;  %v1121_v17 = vld [vmem:[#allocation5 + $0x38] sm:$0xff]  }
  0x5c   : > { %966 = vmatpush3.bf16.msra.mxu0 %v1109_v3  ;;  %1036 = vmatpush3.bf16.msra.mxu1 %v1109_v3  ;;  %v1117_v13 = vld [vmem:[#allocation5 + $0x28] sm:$0xff]   ;;  %v1128_v20 = vld [vmem:[%s1458_s12 + $0x14] ss:$8 sps:$4 sm:$0xff]   ;;  %v1132_v22 = vld [vmem:[%s1458_s12 + $0x10] ss:$8 sps:$4 sm:$0xff]   ;;  %p1206_p6 = pnand %p1205_p4, %p1406_p12 }
  0x5d   : > { %967 = vmatprep.subr.bf16.mxu0 %v1110_v4  ;;  %1029 = vmatprep.subr.bf16.mxu1 %v1110_v4  ;;  %v1122_v18 = vld [vmem:[%s1458_s12] ss:$8 sps:$4 sm:$0xff]   ;;  %v1130_v21 = vld [vmem:[%s1458_s12 + $0x54] ss:$8 sps:$4 sm:$0xff]   ;;  %v1133_v23 = vld [vmem:[%s1458_s12 + $0x50] ss:$8 sps:$4 sm:$0xff]  }
  0x5e   : > { %557 = vmatprep.mubr.bf16.mxu1 %v1127_v12  ;;  %v1125_v19 = vld [vmem:[%s1458_s12 + $0x40] ss:$8 sps:$4 sm:$0xff]   ;;  %v1134_v24 = vld [vmem:[%s1458_s12 + $0x24] ss:$8 sps:$4 sm:$0xff]   ;;  %v1140_v28 = vld [vmem:[%s1458_s12 + $0x34] ss:$8 sps:$4 sm:$0xff]   ;;  %p1207_p8 = pneg %p1206_p6 }
  0x5f   : > { %v1136_v25 = vld [vmem:[%s1458_s12 + $0x64] ss:$8 sps:$4 sm:$0xff]   ;;  %v1138_v26 = vld [vmem:[%s1458_s12 + $0x20] ss:$8 sps:$4 sm:$0xff]   ;;  %v1142_v29 = vld [vmem:[%s1458_s12 + $0x74] ss:$8 sps:$4 sm:$0xff]  }
  0x60   : > { %968 = vmatpush3.bf16.msra.mxu0 %v1111_v5  ;;  %1037 = vmatpush3.bf16.msra.mxu1 %v1111_v5  ;;  %v1139_v27 = vld [vmem:[%s1458_s12 + $0x60] ss:$8 sps:$4 sm:$0xff]   ;;  %v1144_v30 = vld [vmem:[%s1458_s12 + $0x30] ss:$8 sps:$4 sm:$0xff]  }
  0x61   : > { %969 = vmatprep.subr.bf16.mxu0 %v1112_v6  ;;  %1030 = vmatprep.subr.bf16.mxu1 %v1112_v6  ;;  %v1145_v31 = vld [vmem:[%s1458_s12 + $0x70] ss:$8 sps:$4 sm:$0xff]   ;;  %v1487_v34 = vld [vmem:[%s1611_s2] ss:$0 sm:$0xff]  ;;  %s1282_s12 = smov [#allocation7]  }
  0x62   : > { %v1494_v47 = vld [vmem:[%s1612_s3] ss:$0 sm:$0xff]  ;;  %s1208_s24 = sshll.u32 %s1282_s12, 4  ;;  %s1209_s24 = int_to_ptr.vmem [resolvable:$false] %s1208_s24 }
  0x63   : > { %v1502_v53 = vld [vmem:[%s1613_s4] ss:$0 sm:$0xff]  ;;  %s1210_s26 = scalar_lea.vmem %s1209_s24, 2048  ;;  %p1211_p10 = scmp.lt.s32.totalorder %s1563_s28, %s1209_s24 }
  0x64   : > { %970 = vmatpush3.bf16.msra.mxu0 %v1113_v7  ;;  %1038 = vmatpush3.bf16.msra.mxu1 %v1113_v7  ;;  %p1212_p13 = scmp.lt.s32.totalorder %s1210_s26, %s1204_s11 }
  0x65   : > { %971 = vmatprep.subr.bf16.mxu0 %v1114_v8  ;;  %1031 = vmatprep.subr.bf16.mxu1 %v1114_v8 }
  0x66   : > { %p1213_p3 = por %p1212_p13, %p1211_p10 }
  0x68   : > { %972 = vmatpush3.bf16.msra.mxu0 %v1115_v9  ;;  %1039 = vmatpush3.bf16.msra.mxu1 %v1115_v9  ;;  %p1214_p7 = pnand %p1213_p3, %p1207_p8 }
  0x69   : > { %973 = vmatprep.subr.bf16.mxu0 %v1116_v10  ;;  %1032 = vmatprep.subr.bf16.mxu1 %v1116_v10 }
  0x6c   : > { %974 = vmatpush3.bf16.msra.mxu0 %v1117_v13  ;;  %1040 = vmatpush3.bf16.msra.mxu1 %v1117_v13 }
  0x6d   : > { %975 = vmatprep.subr.bf16.mxu0 %v1118_v14  ;;  %1033 = vmatprep.subr.bf16.mxu1 %v1118_v14 }
  0x70   : > { %976 = vmatpush3.bf16.msra.mxu0 %v1119_v15  ;;  %1041 = vmatpush3.bf16.msra.mxu1 %v1119_v15 }
  0x71   : > { %977 = vmatprep.subr.bf16.mxu0 %v1120_v16  ;;  %1034 = vmatprep.subr.bf16.mxu1 %v1120_v16 }
  0x74   : > { %978 = vmatpush3.bf16.msra.mxu0 %v1121_v17  ;;  %1042 = vmatpush3.bf16.msra.mxu1 %v1121_v17 }
  0x77   : > { %526 = vmatmul.mubr.bf16.vlgmr.msra.gmra.mrb[0].mxu0 %v1122_v18  ;;  %558 = vmatmul.mubr.bf16.vlgmr.msra.gmra.mrb[0].mxu1 %v1125_v19 }
  0x78   : > { %533 = vmatprep.mubr.bf16.mxu0 %v1128_v20  ;;  %565 = vmatprep.mubr.bf16.mxu1 %v1130_v21 }
  0x7f   : > { %534 = vmatmul.mubr.bf16.gmra.mrb[4].mxu0 %v1132_v22  ;;  %566 = vmatmul.mubr.bf16.gmra.mrb[4].mxu1 %v1133_v23 }
  0x80   : > { %541 = vmatprep.mubr.bf16.mxu0 %v1134_v24  ;;  %573 = vmatprep.mubr.bf16.mxu1 %v1136_v25 }
  0x87   : > { %542 = vmatmul.mubr.bf16.gmra.mrb[8].mxu0 %v1138_v26  ;;  %574 = vmatmul.mubr.bf16.gmra.mrb[8].mxu1 %v1139_v27 }
  0x88   : > { %549 = vmatprep.mubr.bf16.mxu0 %v1140_v28  ;;  %581 = vmatprep.mubr.bf16.mxu1 %v1142_v29 }
  0x8f   : > { %550 = vmatmul.mubr.bf16.gmra.mrb[12].mxu0 %v1144_v30  ;;  %582 = vmatmul.mubr.bf16.gmra.mrb[12].mxu1 %v1145_v31 }
 0x14a   : > { %v979_v32 = vpop.f32.mrb[0].mxu0  ;;  %v1003_v33 = vpop.f32.mrb[0].mxu1 }
 0x14b   : > { %v980_v35 = vpop.f32.mrb[1].mxu0  ;;  %v1004_v36 = vpop.f32.mrb[1].mxu1 }
 0x14c   : > { %v981_v37 = vadd.f32 %v980_v35, %v979_v32  ;;  %v1005_v38 = vadd.f32 %v1004_v36, %v1003_v33  ;;  %v982_v39 = vpop.f32.mrb[2].mxu0  ;;  %v1006_v40 = vpop.f32.mrb[2].mxu1 }
 0x14d   : > { %v983_v41 = vpop.f32.mrb[3].mxu0  ;;  %v1007_v42 = vpop.f32.mrb[3].mxu1 }
 0x14e   : > { %v528_v43 = vadd.f32 %v981_v37, %v1487_v34  ;;  %v560_v44 = vadd.f32 %v1005_v38, %v1487_v34  ;;  %v984_v45 = vadd.f32 %v983_v41, %v982_v39  ;;  %v1008_v46 = vadd.f32 %v1007_v42, %v1006_v40 }
 0x150   : > { %v590_v48 = vmax.f32 %v528_v43, 0.0  ;;  %v598_v49 = vmax.f32 %v560_v44, 0.0  ;;  %v531_v50 = vadd.f32 %v984_v45, %v1487_v34  ;;  %v563_v51 = vadd.f32 %v1008_v46, %v1487_v34 }
 0x152   : > { %v613_v52 = vmul.f32 %v1494_v47, %v590_v48  ;;  %v621_v54 = vmul.f32 %v1494_v47, %v598_v49  ;;  %v591_v55 = vmax.f32 %v531_v50, 0.0  ;;  %v599_v56 = vmax.f32 %v563_v51, 0.0  ;;  %v985_v57 = vpop.f32.mrb[4].mxu0  ;;  %v1009_v58 = vpop.f32.mrb[4].mxu1 }
 0x153   : > { %v986_v59 = vpop.f32.mrb[5].mxu0  ;;  %v1010_v60 = vpop.f32.mrb[5].mxu1 }
 0x154   : > { %v614_v61 = vmul.f32 %v1494_v47, %v591_v55  ;;  %v622_v62 = vmul.f32 %v1494_v47, %v599_v56  ;;  %v988_v63 = vpop.f32.mrb[6].mxu0  ;;  %v1012_v0 = vpop.f32.mrb[6].mxu1  ;;  %v636_v1 = vadd.f32 %v1502_v53, %v613_v52  ;;  %v644_v2 = vadd.f32 %v1502_v53, %v621_v54 }
 0x155   : > { %v987_v3 = vadd.f32 %v986_v59, %v985_v57  ;;  %v1011_v4 = vadd.f32 %v1010_v60, %v1009_v58  ;;  %v989_v5 = vpop.f32.mrb[7].mxu0  ;;  %v1013_v6 = vpop.f32.mrb[7].mxu1 }
 0x156   : > { %v637_v7 = vadd.f32 %v1502_v53, %v614_v61  ;;  %v645_v8 = vadd.f32 %v1502_v53, %v622_v62  ;;  %v990_v9 = vadd.f32 %v989_v5, %v988_v63  ;;  %v1014_v10 = vadd.f32 %v1013_v6, %v1012_v0 }
 0x157   : > { %v536_v11 = vadd.f32 %v987_v3, %v1487_v34  ;;  %v568_v12 = vadd.f32 %v1011_v4, %v1487_v34 }
 0x158   : > { %v919_v13 = vpack.c.bf16 %v637_v7, %v636_v1  ;;  %v939_v14 = vpack.c.bf16 %v645_v8, %v644_v2  ;;  %v539_v15 = vadd.f32 %v990_v9, %v1487_v34  ;;  %v571_v16 = vadd.f32 %v1014_v10, %v1487_v34 }
 0x159   : > { %v592_v17 = vmax.f32 %v536_v11, 0.0  ;;  %v600_v18 = vmax.f32 %v568_v12, 0.0 }
 0x15a   : > { %920 = vst [vmem:[%s1516_s29] sm:$0xff] %v919_v13   ;;  %959 = vst [vmem:[%s1516_s29 + $0x20] sm:$0xff] %v939_v14   ;;  %v593_v19 = vmax.f32 %v539_v15, 0.0  ;;  %v601_v20 = vmax.f32 %v571_v16, 0.0  ;;  %v991_v21 = vpop.f32.mrb[8].mxu0  ;;  %v1015_v22 = vpop.f32.mrb[8].mxu1 }
 0x15b   : > { %v615_v23 = vmul.f32 %v1494_v47, %v592_v17  ;;  %v623_v24 = vmul.f32 %v1494_v47, %v600_v18  ;;  %v992_v25 = vpop.f32.mrb[9].mxu0  ;;  %v1016_v26 = vpop.f32.mrb[9].mxu1 }
 0x15c   : > { %v616_v27 = vmul.f32 %v1494_v47, %v593_v19  ;;  %v624_v28 = vmul.f32 %v1494_v47, %v601_v20  ;;  %v993_v29 = vadd.f32 %v992_v25, %v991_v21  ;;  %v1017_v30 = vadd.f32 %v1016_v26, %v1015_v22  ;;  %v994_v31 = vpop.f32.mrb[10].mxu0  ;;  %v1018_v32 = vpop.f32.mrb[10].mxu1 }
 0x15d   : > { %v638_v33 = vadd.f32 %v1502_v53, %v615_v23  ;;  %v646_v35 = vadd.f32 %v1502_v53, %v623_v24  ;;  %v995_v36 = vpop.f32.mrb[11].mxu0  ;;  %v1019_v37 = vpop.f32.mrb[11].mxu1 }
 0x15e   : > { %v639_v38 = vadd.f32 %v1502_v53, %v616_v27  ;;  %v647_v39 = vadd.f32 %v1502_v53, %v624_v28  ;;  %v544_v40 = vadd.f32 %v993_v29, %v1487_v34  ;;  %v576_v41 = vadd.f32 %v1017_v30, %v1487_v34 }
 0x15f   : > { %v996_v42 = vadd.f32 %v995_v36, %v994_v31  ;;  %v1020_v43 = vadd.f32 %v1019_v37, %v1018_v32 }
 0x160   : > { %v924_v44 = vpack.c.bf16 %v639_v38, %v638_v33  ;;  %v944_v45 = vpack.c.bf16 %v647_v39, %v646_v35  ;;  %v594_v46 = vmax.f32 %v544_v40, 0.0  ;;  %v602_v48 = vmax.f32 %v576_v41, 0.0 }
 0x161   : > { %v547_v49 = vadd.f32 %v996_v42, %v1487_v34  ;;  %v579_v50 = vadd.f32 %v1020_v43, %v1487_v34 }
 0x162   : > { %956 = vst [vmem:[%s1516_s29 + $0x8] sm:$0xff] %v924_v44   ;;  %960 = vst [vmem:[%s1516_s29 + $0x28] sm:$0xff] %v944_v45   ;;  %v997_v51 = vpop.f32.mrb[12].mxu0  ;;  %v1021_v52 = vpop.f32.mrb[12].mxu1  ;;  %v617_v54 = vmul.f32 %v1494_v47, %v594_v46  ;;  %v625_v55 = vmul.f32 %v1494_v47, %v602_v48 }
 0x163   : > { %v595_v56 = vmax.f32 %v547_v49, 0.0  ;;  %v603_v57 = vmax.f32 %v579_v50, 0.0  ;;  %v998_v58 = vpop.f32.mrb[13].mxu0  ;;  %v1022_v59 = vpop.f32.mrb[13].mxu1 }
 0x164   : > { %v999_v60 = vadd.f32 %v998_v58, %v997_v51  ;;  %v1023_v61 = vadd.f32 %v1022_v59, %v1021_v52  ;;  %v1000_v62 = vpop.f32.mrb[14].mxu0  ;;  %v1024_v63 = vpop.f32.mrb[14].mxu1  ;;  %v640_v8 = vadd.f32 %v1502_v53, %v617_v54  ;;  %v648_v9 = vadd.f32 %v1502_v53, %v625_v55 }
 0x165   : > { %v618_v0 = vmul.f32 %v1494_v47, %v595_v56  ;;  %v626_v1 = vmul.f32 %v1494_v47, %v603_v57  ;;  %v1001_v2 = vpop.f32.mrb[15].mxu0  ;;  %v1025_v3 = vpop.f32.mrb[15].mxu1 }
 0x166   : > { %v552_v4 = vadd.f32 %v999_v60, %v1487_v34  ;;  %v584_v5 = vadd.f32 %v1023_v61, %v1487_v34  ;;  %v1002_v6 = vadd.f32 %v1001_v2, %v1000_v62  ;;  %v1026_v7 = vadd.f32 %v1025_v3, %v1024_v63 }
 0x167   : > { %v641_v10 = vadd.f32 %v1502_v53, %v618_v0  ;;  %v649_v11 = vadd.f32 %v1502_v53, %v626_v1 }
 0x168   : > { %v596_v12 = vmax.f32 %v552_v4, 0.0  ;;  %v604_v13 = vmax.f32 %v584_v5, 0.0  ;;  %v555_v14 = vadd.f32 %v1002_v6, %v1487_v34  ;;  %v587_v15 = vadd.f32 %v1026_v7, %v1487_v34 }
 0x169   : > { %v929_v16 = vpack.c.bf16 %v641_v10, %v640_v8  ;;  %v949_v17 = vpack.c.bf16 %v649_v11, %v648_v9 }
 0x16a   : > { %v619_v18 = vmul.f32 %v1494_v47, %v596_v12  ;;  %v627_v19 = vmul.f32 %v1494_v47, %v604_v13  ;;  %v597_v20 = vmax.f32 %v555_v14, 0.0  ;;  %v605_v21 = vmax.f32 %v587_v15, 0.0 }
 0x16b   : > { %957 = vst [vmem:[%s1516_s29 + $0x10] sm:$0xff] %v929_v16   ;;  %961 = vst [vmem:[%s1516_s29 + $0x30] sm:$0xff] %v949_v17  }
 0x16c   : > { %v620_v22 = vmul.f32 %v1494_v47, %v597_v20  ;;  %v628_v23 = vmul.f32 %v1494_v47, %v605_v21  ;;  %v642_v34 = vadd.f32 %v1502_v53, %v619_v18  ;;  %v650_v24 = vadd.f32 %v1502_v53, %v627_v19 }
 0x16e   : > { %v643_v25 = vadd.f32 %v1502_v53, %v620_v22  ;;  %v651_v26 = vadd.f32 %v1502_v53, %v628_v23 }
 0x170   : > { %v934_v47 = vpack.c.bf16 %v643_v25, %v642_v34  ;;  %v954_v27 = vpack.c.bf16 %v651_v26, %v650_v24 }
 0x172   : > { %958 = vst [vmem:[%s1516_s29 + $0x18] sm:$0xff] %v934_v47   ;;  %962 = vst [vmem:[%s1516_s29 + $0x38] sm:$0xff] %v954_v27  }
 0x173   : > { %1217 = shalt.err (!%p1214_p7)
}
 0x174   : > { %s1218_s14 = scalar_lea.hbm %s1561_s27, 1024  ;;  %s1222_s15 = scalar_lea.hbm %s1614_s5, 2048 }
 0x175   : > { %p1219_p9 = scmp.ne.s32.totalorder %s1561_s27, %s1218_s14  ;;  %p1223_p5 = scmp.lt.u32.totalorder %s1561_s27, %s1614_s5 }
 0x176   : > { %p1224_p11 = scmp.lt.u32.totalorder %s1222_s15, %s1218_s14  ;;  %p1226_p4 = scmp.lt.u32.totalorder %s1218_s14, %s1561_s27 }
 0x177   : > { %p1220_p2 = pnand %p1219_p9, %p1406_p12 }
 0x178   : > { %p1225_p1 = por %p1224_p11, %p1223_p5 }
 0x179   : > { %p1221_p0 = pneg %p1220_p2 }
 0x17a   : > { %p1227_p6 = por %p1226_p4, %p1225_p1 }
 0x17c   : > { %p1228_p8 = pnand %p1227_p6, %p1221_p0 }
 0x17e   : > { %1231 = shalt.err (!%p1228_p8)
}
 0x17f   : > { %s1283_s13 = smov 64   ;;  %s1284_s16 = smov 4  }
 0x180   : > { %1049 = dma.vmem_to_hbm [thread:$0]  (%p1406_p12), %s1563_s28, 1024, %s1561_s27, %s733_s22, %s1283_s13, %s1283_s13, %s1284_s16  }
 0x181 PF: > { %s761_s17 = sand.u32 1, %s1262_s18   ;;  %p1629_p10 = scmp.ne.s32.totalorder %s1619_s25, 0 }
 0x182   : > { %p1630_p13 = scmp.ge.s32.totalorder %s1274_s21, 2  ;;  %s762_s11 = scalar_lea.sflag [#allocation4], %s761_s17 }
 0x184   : > { %p1060_p3 = pnand %p1630_p13, %p1629_p10 }
 0x186   : > { %1257 = dma.done.wait (!%p1060_p3), %s762_s11, 1024  }
 0x187   : > { %1259 = vsyncadd (!%p1060_p3), %s762_s11, 4294966272  ;;  %p19_p7 = scmp.ge.s32.totalorder %s1371_s30, 4   ;;  %s1631_s18 = smov %s1266_s19 }
 0x188   : > { %s1632_s19 = smov %s1270_s20  ;;  %s1633_s20 = smov %s1402_s8 }
 0x189   : > { %s1634_s21 = smov %s1371_s30  ;;  %21 = sbr.rel (!%p19_p7) target bundleno = 6 (0x6), region = 89 }
 0x190   :  { %767 = vsyncpa [#allocation3], 1 }
 0x191   :  { %769 = vsyncpa [#allocation3 + $0x1], 1 }
 0x192   :  { %770 = vsyncpa [#allocation6], 1 }
 0x193   :  { %771 = vsyncpa [#allocation4], 1 }
 0x194   :  { %773 = vsyncpa [#allocation4 + $0x1], 1 }

</bundles_post_ra>
